<compile_context>
chip_gen: v5e
topology: v5e:2x2
jax: 0.10.0
libtpu: 0.0.40
codegen_flags: <defaults>
</compile_context>

<pallas_src>
import numpy as np
import jax
import jax.numpy as jnp
from jax.experimental import pallas as pl
from jax.experimental.pallas import tpu as pltpu

_LANES = 128
_MAX_BLOCK_ROWS = 2048          # (2048, 128) f32 tile = 1 MiB


def _cdiv(a, b):
    return -(-a // b)


def _round_up(x, m):
    return _cdiv(x, m) * m


def _choose_tiling(rows, max_block_rows):
    """Pick (ncores, blocks_per_core, block_rows) such that
       * grid is (ncores, bpc) with ncores == 2 whenever possible (v7x),
       * ncores * bpc * block_rows >= rows          (full coverage),
       * (ncores * bpc - 1) * block_rows < rows     (no fully out-of-range
         block; at most the single globally-last block is partial),
       * block_rows is a multiple of 32 when achievable (so packed bf16/int8
         gt & mask slabs can be tiled directly), else a multiple of 8.
    """
    max_br = min(_round_up(max_block_rows, 8), _round_up(rows, 8))
    for ncores in (2, 1):
        bpc = _cdiv(rows, ncores * max_br)
        total = ncores * bpc
        need = _cdiv(rows, total)                  # need <= max_br
        for align in (32, 8):
            br = min(_round_up(need, align), max_br)
            if br >= need and (total - 1) * br < rows:
                return ncores, bpc, br
    return 1, 1, _round_up(rows, 8)                # unreachable for rows >= 8


def _make_kernel(block_rows, bpc, ncores, emit_loss, tail_rows):
    """tail_rows == block_rows when the grid covers the slab exactly;
    otherwise only the globally-last block is partial and row-masked."""
    groups = block_rows // 8

    def kernel(pred_ref, gt_ref, mask_ref, *outs):
        if emit_loss:
            loss_ref, negloss_ref, pc_ref, nc_ref, ps_ref = outs
        else:
            negloss_ref, pc_ref, nc_ref, ps_ref = outs

        c = pl.program_id(0)          # core-split axis ("parallel")
        i = pl.program_id(1)          # chunk axis ("arbitrary")

        @pl.when(i == 0)
        def _():
            pc_ref[...] = jnp.zeros_like(pc_ref)
            nc_ref[...] = jnp.zeros_like(nc_ref)
            ps_ref[...] = jnp.zeros_like(ps_ref)

        def vreg_sum(x):
            # (block_rows,128) -> (groups,8,128) keeps (8,128) tiles intact
            # (free); the axis-0 sum is plain VALU vreg adds (no XLU work).
            return jnp.sum(x.reshape(groups, 8, _LANES), axis=0)

        def do_block(row_valid=None):
            pred = pred_ref[...].astype(jnp.float32)
            gt = gt_ref[...].astype(jnp.float32)
            mask = mask_ref[...].astype(jnp.float32)
            if row_valid is not None:      # only in the single partial block
                pred = jnp.where(row_valid, pred, 0.5)
                gt = jnp.where(row_valid, gt, 0.0)
                mask = jnp.where(row_valid, mask, 0.0)

            # torch `.byte()` truncation of the products (gt may be soft).
            pos = jnp.floor(gt * mask)
            neg = jnp.floor((1.0 - gt) * mask)

            # torch binary_cross_entropy(reduction='none'); log clamped at -100.
            log_p = jnp.maximum(jnp.log(pred), -100.0)
            log_1mp = jnp.maximum(jnp.log(1.0 - pred), -100.0)
            loss = -(gt * log_p + (1.0 - gt) * log_1mp)

            if emit_loss:
                loss_ref[...] = loss
            negloss_ref[...] = loss * neg

            # One-vreg resident accumulators (final reduction in the wrapper).
            pc_ref[...] += vreg_sum(pos)[None]
            nc_ref[...] += vreg_sum(neg)[None]
            ps_ref[...] += vreg_sum(loss * pos)[None]

        if tail_rows == block_rows:
            do_block()                     # steady state: no masking at all
        else:
            is_last = jnp.logical_and(c == ncores - 1, i == bpc - 1)

            @pl.when(jnp.logical_not(is_last))
            def _():
                do_block()

            @pl.when(is_last)
            def _():
                rid = jax.lax.broadcasted_iota(
                    jnp.int32, (block_rows, _LANES), 0)
                do_block(row_valid=rid < tail_rows)

    return kernel


def balance_cross_entropy_loss(pred, gt, mask,
                               negative_ratio=3.0, eps=1e-6,
                               return_origin=False, _block_rows=None):
    orig_shape = pred.shape
    n = int(np.prod(orig_shape))
    pad = (-n) % (8 * _LANES)            # minimal flat pad -> (rows, 128) slab
    rows = (n + pad) // _LANES

    cap = _MAX_BLOCK_ROWS if _block_rows is None else max(8, int(_block_rows))
    ncores, bpc, block_rows = _choose_tiling(rows, cap)
    total_blocks = ncores * bpc
    tail_rows = rows - (total_blocks - 1) * block_rows   # in [8, block_rows]

    def _as_slab(x):
        x = jnp.asarray(x)
        itemsize = jnp.dtype(x.dtype).itemsize
        # Sub-32-bit {0,1} label maps stream through uncast when the tile is
        # compatible with their packed sublane layout; otherwise promote.
        keep = (itemsize in (1, 2, 4) and x.dtype != jnp.bool_
                and block_rows % (8 * (4 // itemsize)) == 0)
        if not keep:
            x = x.astype(jnp.float32)
        x = x.reshape(-1)
        if pad:
            x = jnp.pad(x, (0, pad))     # zero pad contributes exactly zero
        return x.reshape(rows, _LANES)

    pred2 = _as_slab(pred)
    gt2 = _as_slab(gt)
    mask2 = _as_slab(mask)

    tile_spec = pl.BlockSpec((block_rows, _LANES), lambda c, i: (c * bpc + i, 0))
    acc_spec = pl.BlockSpec((1, 8, _LANES), lambda c, i: (c, 0, 0))

    out_shapes, out_specs = [], []
    if return_origin:
        out_shapes.append(jax.ShapeDtypeStruct((rows, _LANES), jnp.float32))
        out_specs.append(tile_spec)
    out_shapes += [
        jax.ShapeDtypeStruct((rows, _LANES), jnp.float32),             # negloss
        jax.ShapeDtypeStruct((ncores, 8, _LANES), jnp.float32),        # pos cnt
        jax.ShapeDtypeStruct((ncores, 8, _LANES), jnp.float32),        # neg cnt
        jax.ShapeDtypeStruct((ncores, 8, _LANES), jnp.float32),        # pos sum
    ]
    out_specs += [tile_spec, acc_spec, acc_spec, acc_spec]

    outs = pl.pallas_call(
        _make_kernel(block_rows, bpc, ncores, return_origin, tail_rows),
        out_shape=tuple(out_shapes),
        grid_spec=pltpu.PrefetchScalarGridSpec(
            num_scalar_prefetch=0,
            grid=(ncores, bpc),
            in_specs=[tile_spec, tile_spec, tile_spec],
            out_specs=out_specs,
        ),
        compiler_params=pltpu.CompilerParams(
            dimension_semantics=("parallel", "arbitrary"),
            vmem_limit_bytes=28 * 1024 * 1024,
        ),
    )(pred2, gt2, mask2)

    if return_origin:
        loss2, negloss2, pc_acc, nc_acc, ps_acc = outs
    else:
        negloss2, pc_acc, nc_acc, ps_acc = outs

    # Per-slot counts are exact integers in f32 -> exact int32 totals
    # (int32 is sufficient below ~2.1e9 elements).
    pos_cnt = jnp.sum(pc_acc.astype(jnp.int32))
    neg_cnt = jnp.sum(nc_acc.astype(jnp.int32))
    pos_sum = jnp.sum(ps_acc)

    # negative_count = min(int(neg_count), int(pos_count * ratio))
    k = jnp.minimum(
        neg_cnt,
        jnp.floor(pos_cnt.astype(jnp.float32) * negative_ratio).astype(jnp.int32))

    # TODO(synk): exact dynamic-k top-k has no clean Pallas TPU equivalent; for
    # production-sized inputs replace this O(N log N) sort+cumsum with an O(N)
    # two-pass radix/histogram threshold selection fused into the stats pass.
    neg_flat = negloss2.reshape(-1)             # padded / masked entries are 0
    sorted_desc = -jnp.sort(-neg_flat)
    csum = jnp.cumsum(sorted_desc)
    topk_sum = jnp.where(k > 0, csum[jnp.maximum(k - 1, 0)], 0.0)

    denom = (pos_cnt + k).astype(jnp.float32) + eps
    balance_loss = (pos_sum + topk_sum) / denom

    if return_origin:
        loss = loss2.reshape(-1)[:n].reshape(orig_shape)
        return balance_loss, loss
    return balance_loss


def _reference(pred, gt, mask, negative_ratio=3.0, eps=1e-6):
    pred = np.asarray(pred, np.float64)
    gt = np.asarray(gt, np.float64)
    mask = np.asarray(mask, np.float64)
    pos = np.floor(gt * mask)
    neg = np.floor((1.0 - gt) * mask)
    pc = int(pos.sum())
    nc = min(int(neg.sum()), int(pc * negative_ratio))
    loss = -(gt * np.maximum(np.log(pred), -100.0)
             + (1.0 - gt) * np.maximum(np.log(1.0 - pred), -100.0))
    pos_loss = loss * pos
    neg_loss = np.sort((loss * neg).reshape(-1))[::-1][:nc]
    return (pos_loss.sum() + neg_loss.sum()) / (pc + nc + eps)


if __name__ == "__main__":
    key = jax.random.PRNGKey(0)

    def _make_inputs(shape, k, label_dtype=jnp.float32):
        k1, k2, k3 = jax.random.split(k, 3)
        pred = jax.nn.sigmoid(jax.random.normal(k1, shape, dtype=jnp.float32))
        gt = (jax.random.uniform(k2, shape) > 0.7).astype(label_dtype)
        mask = (jax.random.uniform(k3, shape) > 0.2).astype(label_dtype)
        return pred, gt, mask

    ks = jax.random.split(key, 4)

    # Case 1: exactly covered slab (2048 elems -> 16x128), (2,1) grid.
    p, g, m = _make_inputs((2, 4, 16, 16), ks[0])
    out = jax.block_until_ready(balance_cross_entropy_loss(p, g, m))
    ref = _reference(np.array(p), np.array(g), np.array(m))
    assert abs(float(out) - ref) < 1e-4 * max(1.0, abs(ref)), (float(out), ref)

    # Case 2: multi-block grid per core (block override) + return_origin.
    p, g, m = _make_inputs((2, 4, 32, 32), ks[1])
    out2, loss_map = balance_cross_entropy_loss(p, g, m, return_origin=True,
                                                _block_rows=8)
    out2 = jax.block_until_ready(out2)
    ref2 = _reference(np.array(p), np.array(g), np.array(m))
    assert abs(float(out2) - ref2) < 1e-4 * max(1.0, abs(ref2)), (float(out2), ref2)
    p64 = np.array(p, np.float64)
    g64 = np.array(g, np.float64)
    ref_loss = -(g64 * np.maximum(np.log(p64), -100.0)
                 + (1.0 - g64) * np.maximum(np.log(1.0 - p64), -100.0))
    assert np.max(np.abs(np.array(loss_map, np.float64) - ref_loss)) < 1e-4

    # Case 3: ragged tail (2500 elems) -> zero pad + masked partial last block.
    p, g, m = _make_inputs((2, 2, 25, 25), ks[2])
    out3 = jax.block_until_ready(balance_cross_entropy_loss(p, g, m))
    ref3 = _reference(np.array(p), np.array(g), np.array(m))
    assert abs(float(out3) - ref3) < 1e-4 * max(1.0, abs(ref3)), (float(out3), ref3)

    # Case 4: bf16 {0,1} gt/mask stream through uncast (32-row blocks).
    p, g, m = _make_inputs((1, 1, 64, 128), ks[3], label_dtype=jnp.bfloat16)
    out4 = jax.block_until_ready(balance_cross_entropy_loss(p, g, m))
    ref4 = _reference(np.array(p), np.array(g, np.float32),
                      np.array(m, np.float32))
    assert abs(float(out4) - ref4) < 1e-4 * max(1.0, abs(ref4)), (float(out4), ref4)

    print("KERNEL_OK")
</pallas_src>

<mosaic_0001>
module attributes {stable_mosaic.version = 11 : i64} {
  func.func @kernel(%arg0: i32, %arg1: i32, %arg2: memref<8x128xf32, #tpu.memory_space<vmem>>, %arg3: memref<8x128xf32, #tpu.memory_space<vmem>>, %arg4: memref<8x128xf32, #tpu.memory_space<vmem>>, %arg5: memref<8x128xf32, #tpu.memory_space<vmem>>, %arg6: memref<1x8x128xf32, #tpu.memory_space<vmem>>, %arg7: memref<1x8x128xf32, #tpu.memory_space<vmem>>, %arg8: memref<1x8x128xf32, #tpu.memory_space<vmem>>) attributes {dimension_semantics = [#tpu.dimension_semantics<parallel>, #tpu.dimension_semantics<arbitrary>], iteration_bounds = array<i64: 2, 1>, scalar_prefetch = 0 : i64, scratch_operands = 0 : i64, tpu.core_type = #tpu.core_type<tc>, window_params = [{transform_indices = @transform_0, window_bounds = array<i64: 8, 128>}, {transform_indices = @transform_1, window_bounds = array<i64: 8, 128>}, {transform_indices = @transform_2, window_bounds = array<i64: 8, 128>}, {transform_indices = @transform_3, window_bounds = array<i64: 8, 128>}, {transform_indices = @transform_4, window_bounds = array<i64: 1, 8, 128>}, {transform_indices = @transform_5, window_bounds = array<i64: 1, 8, 128>}, {transform_indices = @transform_6, window_bounds = array<i64: 1, 8, 128>}]} {
    %c0_i32 = arith.constant 0 : i32
    %0 = arith.cmpi eq, %arg1, %c0_i32 : i32
    %1 = arith.extui %0 : i1 to i32
    %c0_i32_0 = arith.constant 0 : i32
    %2 = arith.cmpi ne, %1, %c0_i32_0 : i32
    scf.if %2 {
      %cst_34 = arith.constant 0.000000e+00 : f32
      %48 = vector.broadcast %cst_34 : f32 to vector<1x8x128xf32>
      %c0_35 = arith.constant 0 : index
      %c0_36 = arith.constant 0 : index
      %c0_37 = arith.constant 0 : index
      %49 = vector.load %arg6[%c0_35, %c0_36, %c0_37] : memref<1x8x128xf32, #tpu.memory_space<vmem>>, vector<1x8x128xf32>
      tpu.vector_store %arg6[%c0_35, %c0_36, %c0_37], %48 {strides = array<i32>} : memref<1x8x128xf32, #tpu.memory_space<vmem>>, vector<1x8x128xf32>,
      %cst_38 = arith.constant 0.000000e+00 : f32
      %50 = vector.broadcast %cst_38 : f32 to vector<1x8x128xf32>
      %c0_39 = arith.constant 0 : index
      %c0_40 = arith.constant 0 : index
      %c0_41 = arith.constant 0 : index
      %51 = vector.load %arg7[%c0_39, %c0_40, %c0_41] : memref<1x8x128xf32, #tpu.memory_space<vmem>>, vector<1x8x128xf32>
      tpu.vector_store %arg7[%c0_39, %c0_40, %c0_41], %50 {strides = array<i32>} : memref<1x8x128xf32, #tpu.memory_space<vmem>>, vector<1x8x128xf32>,
      %cst_42 = arith.constant 0.000000e+00 : f32
      %52 = vector.broadcast %cst_42 : f32 to vector<1x8x128xf32>
      %c0_43 = arith.constant 0 : index
      %c0_44 = arith.constant 0 : index
      %c0_45 = arith.constant 0 : index
      %53 = vector.load %arg8[%c0_43, %c0_44, %c0_45] : memref<1x8x128xf32, #tpu.memory_space<vmem>>, vector<1x8x128xf32>
      tpu.vector_store %arg8[%c0_43, %c0_44, %c0_45], %52 {strides = array<i32>} : memref<1x8x128xf32, #tpu.memory_space<vmem>>, vector<1x8x128xf32>,
    } else {
    }
    %c0 = arith.constant 0 : index
    %c0_1 = arith.constant 0 : index
    %3 = vector.load %arg2[%c0, %c0_1] : memref<8x128xf32, #tpu.memory_space<vmem>>, vector<8x128xf32>
    %c0_2 = arith.constant 0 : index
    %c0_3 = arith.constant 0 : index
    %4 = vector.load %arg3[%c0_2, %c0_3] : memref<8x128xf32, #tpu.memory_space<vmem>>, vector<8x128xf32>
    %c0_4 = arith.constant 0 : index
    %c0_5 = arith.constant 0 : index
    %5 = vector.load %arg4[%c0_4, %c0_5] : memref<8x128xf32, #tpu.memory_space<vmem>>, vector<8x128xf32>
    %6 = arith.mulf %4, %5 : vector<8x128xf32>
    %7 = math.floor %6 : vector<8x128xf32>
    %cst = arith.constant 1.000000e+00 : f32
    %8 = vector.broadcast %cst : f32 to vector<8x128xf32>
    %9 = arith.subf %8, %4 : vector<8x128xf32>
    %10 = arith.mulf %9, %5 : vector<8x128xf32>
    %11 = math.floor %10 : vector<8x128xf32>
    %12 = math.log %3 : vector<8x128xf32>
    %cst_6 = arith.constant -1.000000e+02 : f32
    %13 = vector.broadcast %cst_6 : f32 to vector<8x128xf32>
    %14 = arith.maximumf %12, %13 : vector<8x128xf32>
    %cst_7 = arith.constant 1.000000e+00 : f32
    %15 = vector.broadcast %cst_7 : f32 to vector<8x128xf32>
    %16 = arith.subf %15, %3 : vector<8x128xf32>
    %17 = math.log %16 : vector<8x128xf32>
    %cst_8 = arith.constant -1.000000e+02 : f32
    %18 = vector.broadcast %cst_8 : f32 to vector<8x128xf32>
    %19 = arith.maximumf %17, %18 : vector<8x128xf32>
    %20 = arith.mulf %4, %14 : vector<8x128xf32>
    %cst_9 = arith.constant 1.000000e+00 : f32
    %21 = vector.broadcast %cst_9 : f32 to vector<8x128xf32>
    %22 = arith.subf %21, %4 : vector<8x128xf32>
    %23 = arith.mulf %22, %19 : vector<8x128xf32>
    %24 = arith.addf %20, %23 : vector<8x128xf32>
    %cst_10 = arith.constant 0.000000e+00 : f32
    %25 = vector.broadcast %cst_10 : f32 to vector<8x128xf32>
    %26 = arith.subf %25, %24 : vector<8x128xf32>
    %27 = arith.mulf %26, %11 : vector<8x128xf32>
    %c0_11 = arith.constant 0 : index
    %c0_12 = arith.constant 0 : index
    %28 = vector.load %arg5[%c0_11, %c0_12] : memref<8x128xf32, #tpu.memory_space<vmem>>, vector<8x128xf32>
    tpu.vector_store %arg5[%c0_11, %c0_12], %27 {strides = array<i32>} : memref<8x128xf32, #tpu.memory_space<vmem>>, vector<8x128xf32>,
    %c0_13 = arith.constant 0 : index
    %c0_14 = arith.constant 0 : index
    %c0_15 = arith.constant 0 : index
    %29 = vector.load %arg6[%c0_13, %c0_14, %c0_15] : memref<1x8x128xf32, #tpu.memory_space<vmem>>, vector<1x8x128xf32>
    %30 = vector.shape_cast %7 : vector<8x128xf32> to vector<1x8x128xf32>
    %cst_16 = arith.constant dense<0.000000e+00> : vector<8x128xf32>
    %31 = vector.multi_reduction <add>, %30, %cst_16 [0] : vector<1x8x128xf32> to vector<8x128xf32>
    %32 = vector.shape_cast %31 : vector<8x128xf32> to vector<1x8x128xf32>
    %33 = arith.addf %29, %32 : vector<1x8x128xf32>
    %c0_17 = arith.constant 0 : index
    %c0_18 = arith.constant 0 : index
    %c0_19 = arith.constant 0 : index
    %34 = vector.load %arg6[%c0_17, %c0_18, %c0_19] : memref<1x8x128xf32, #tpu.memory_space<vmem>>, vector<1x8x128xf32>
    tpu.vector_store %arg6[%c0_17, %c0_18, %c0_19], %33 {strides = array<i32>} : memref<1x8x128xf32, #tpu.memory_space<vmem>>, vector<1x8x128xf32>,
    %c0_20 = arith.constant 0 : index
    %c0_21 = arith.constant 0 : index
    %c0_22 = arith.constant 0 : index
    %35 = vector.load %arg7[%c0_20, %c0_21, %c0_22] : memref<1x8x128xf32, #tpu.memory_space<vmem>>, vector<1x8x128xf32>
    %36 = vector.shape_cast %11 : vector<8x128xf32> to vector<1x8x128xf32>
    %cst_23 = arith.constant dense<0.000000e+00> : vector<8x128xf32>
    %37 = vector.multi_reduction <add>, %36, %cst_23 [0] : vector<1x8x128xf32> to vector<8x128xf32>
    %38 = vector.shape_cast %37 : vector<8x128xf32> to vector<1x8x128xf32>
    %39 = arith.addf %35, %38 : vector<1x8x128xf32>
    %c0_24 = arith.constant 0 : index
    %c0_25 = arith.constant 0 : index
    %c0_26 = arith.constant 0 : index
    %40 = vector.load %arg7[%c0_24, %c0_25, %c0_26] : memref<1x8x128xf32, #tpu.memory_space<vmem>>, vector<1x8x128xf32>
    tpu.vector_store %arg7[%c0_24, %c0_25, %c0_26], %39 {strides = array<i32>} : memref<1x8x128xf32, #tpu.memory_space<vmem>>, vector<1x8x128xf32>,
    %c0_27 = arith.constant 0 : index
    %c0_28 = arith.constant 0 : index
    %c0_29 = arith.constant 0 : index
    %41 = vector.load %arg8[%c0_27, %c0_28, %c0_29] : memref<1x8x128xf32, #tpu.memory_space<vmem>>, vector<1x8x128xf32>
    %42 = arith.mulf %26, %7 : vector<8x128xf32>
    %43 = vector.shape_cast %42 : vector<8x128xf32> to vector<1x8x128xf32>
    %cst_30 = arith.constant dense<0.000000e+00> : vector<8x128xf32>
    %44 = vector.multi_reduction <add>, %43, %cst_30 [0] : vector<1x8x128xf32> to vector<8x128xf32>
    %45 = vector.shape_cast %44 : vector<8x128xf32> to vector<1x8x128xf32>
    %46 = arith.addf %41, %45 : vector<1x8x128xf32>
    %c0_31 = arith.constant 0 : index
    %c0_32 = arith.constant 0 : index
    %c0_33 = arith.constant 0 : index
    %47 = vector.load %arg8[%c0_31, %c0_32, %c0_33] : memref<1x8x128xf32, #tpu.memory_space<vmem>>, vector<1x8x128xf32>
    tpu.vector_store %arg8[%c0_31, %c0_32, %c0_33], %46 {strides = array<i32>} : memref<1x8x128xf32, #tpu.memory_space<vmem>>, vector<1x8x128xf32>,
    return
  }
  func.func @transform_0(%arg0: i32, %arg1: i32) -> (i32, i32) {
    %c1_i32 = arith.constant 1 : i32
    %0 = arith.muli %arg0, %c1_i32 : i32
    %1 = arith.addi %0, %arg1 : i32
    %c0_i32 = arith.constant 0 : i32
    %c0_i32_0 = arith.constant 0 : i32
    return %1, %c0_i32 : i32, i32
  }
  func.func @transform_1(%arg0: i32, %arg1: i32) -> (i32, i32) {
    %c1_i32 = arith.constant 1 : i32
    %0 = arith.muli %arg0, %c1_i32 : i32
    %1 = arith.addi %0, %arg1 : i32
    %c0_i32 = arith.constant 0 : i32
    %c0_i32_0 = arith.constant 0 : i32
    return %1, %c0_i32 : i32, i32
  }
  func.func @transform_2(%arg0: i32, %arg1: i32) -> (i32, i32) {
    %c1_i32 = arith.constant 1 : i32
    %0 = arith.muli %arg0, %c1_i32 : i32
    %1 = arith.addi %0, %arg1 : i32
    %c0_i32 = arith.constant 0 : i32
    %c0_i32_0 = arith.constant 0 : i32
    return %1, %c0_i32 : i32, i32
  }
  func.func @transform_3(%arg0: i32, %arg1: i32) -> (i32, i32) {
    %c1_i32 = arith.constant 1 : i32
    %0 = arith.muli %arg0, %c1_i32 : i32
    %1 = arith.addi %0, %arg1 : i32
    %c0_i32 = arith.constant 0 : i32
    %c0_i32_0 = arith.constant 0 : i32
    return %1, %c0_i32 : i32, i32
  }
  func.func @transform_4(%arg0: i32, %arg1: i32) -> (i32, i32, i32) {
    %c0_i32 = arith.constant 0 : i32
    %c0_i32_0 = arith.constant 0 : i32
    %c0_i32_1 = arith.constant 0 : i32
    return %arg0, %c0_i32, %c0_i32_0 : i32, i32, i32
  }
  func.func @transform_5(%arg0: i32, %arg1: i32) -> (i32, i32, i32) {
    %c0_i32 = arith.constant 0 : i32
    %c0_i32_0 = arith.constant 0 : i32
    %c0_i32_1 = arith.constant 0 : i32
    return %arg0, %c0_i32, %c0_i32_0 : i32, i32, i32
  }
  func.func @transform_6(%arg0: i32, %arg1: i32) -> (i32, i32, i32) {
    %c0_i32 = arith.constant 0 : i32
    %c0_i32_0 = arith.constant 0 : i32
    %c0_i32_1 = arith.constant 0 : i32
    return %arg0, %c0_i32, %c0_i32_0 : i32, i32, i32
  }
}

</mosaic_0001>

<bundles_post_ra>
// kernel: tpu_custom_call.1
= control target key start
LH: loop header
LB: loop body
LE: loop exit
PB: predicated region body
PF: predicated region fallthrough
CT: control target
= control target key end

     0   :  { %s1419_s0 = inlined_call_operand.hbm [shape: f32[16,128], index: 0, kind: input, shape index: {}]   ;;  %s1420_s1 = inlined_call_operand.hbm [shape: f32[16,128], index: 1, kind: input, shape index: {}]   ;;  %s1421_s2 = inlined_call_operand.hbm [shape: f32[16,128], index: 2, kind: input, shape index: {}]   ;;  %s1422_s3 = inlined_call_operand.hbm [shape: f32[16,128], index: 3, kind: output, shape index: {0}]   ;;  %s1423_s4 = inlined_call_operand.hbm [shape: f32[2,8,128], index: 4, kind: output, shape index: {1}]   ;;  %s1424_s5 = inlined_call_operand.hbm [shape: f32[2,8,128], index: 5, kind: output, shape index: {2}]   ;;  %s1425_s6 = inlined_call_operand.hbm [shape: f32[2,8,128], index: 6, kind: output, shape index: {3}]  }
   0x1   :  { %1433 = sst [smem:[#allocation25_spill]] %s1420_s1 }
   0x2   :  { %12 = vsyncpa [#allocation3], 0 }
   0x3   :  { %14 = vsyncpa [#allocation3 + $0x1], 0 }
   0x4   :  { %15 = vsyncpa [#allocation6], 0 }
   0x5   :  { %17 = vsyncpa [#allocation6 + $0x1], 0 }
   0x6   :  { %18 = vsyncpa [#allocation4], 0 }
   0x7   :  { %20 = vsyncpa [#allocation4 + $0x1], 0 }
   0x8   :  { %21 = vsyncpa [#allocation10], 0 }
   0x9   :  { %23 = vsyncpa [#allocation10 + $0x1], 0 }
   0xa   :  { %24 = vsyncpa [#allocation13], 0 }
   0xb   :  { %26 = vsyncpa [#allocation13 + $0x1], 0  ;;  %s1160_s21 = smov 0   ;;  %s1162_s22 = smov 0  }
   0xc   :  { %s1164_s23 = smov 0   ;;  %s1166_s24 = smov 0  }
   0xd   :  { %s1168_s25 = smov 0   ;;  %s1170_s26 = smov 0  }
   0xe LB: > { %1434 = sst [smem:[#allocation19_spill]] %s1111_s23  ;;  %s1191_s27 = sadd.s32 4294967295, %s1123_s26   ;;  %s1123_s26 = sphi %s1170_s26, %s32_s26   ;;  %s1119_s25 = sphi %s1168_s25, %s1453_s25   ;;  %s1115_s24 = sphi %s1166_s24, %s1452_s24   ;;  %s1111_s23 = sphi %s1164_s23, %s1451_s23   ;;  %s1107_s22 = sphi %s1162_s22, %s1455_s22   ;;  %s1103_s21 = sphi %s1160_s21, %s1454_s21  }
   0xf   : > { %1435 = sst [smem:[#allocation20_spill]] %s1119_s25  ;;  %s1426_s28 = sadd.s32 4294967294, %s1123_s26  }
  0x10   : > { %1436 = sst [smem:[#allocation21_spill]] %s1123_s26  ;;  %s44_s29 = sadd.s32 1, %s1119_s25 }
  0x11   : > { %s53_s30 = sadd.s32 1, %s1111_s23  ;;  %p46_p0 = scmp.ge.s32.totalorder %s44_s29, 2 }
  0x12   : > { %p60_p1 = scmp.ne.s32.totalorder %s1111_s23, %s1107_s22  ;;  %p61_p2 = scmp.eq.s32.totalorder %s1123_s26, 0 }
  0x13   : > { %p66_p3 = scmp.ne.s32.totalorder %s1107_s22, %s1103_s21  ;;  %s1457_s29 = smov (%p46_p0, %s44_s29), 0 }
  0x14   : > { %1437 = sst [smem:[#allocation22_spill]] %s1457_s29  ;;  %p1203_p4 = por %p61_p2, %p60_p1 }
  0x15   : > { %p67_p5 = scmp.eq.s32.totalorder %s1191_s27, 0  ;;  %s50_s8 = ssub.s32 %s1119_s25, %s1457_s29 }
  0x16   : > { %p148_p6 = scmp.eq.s32.totalorder %s1191_s27, 1  ;;  %p51_p7 = scmp.eq.s32.totalorder %s50_s8, 0 }
  0x17   : > { %p1211_p8 = por %p67_p5, %p66_p3  ;;  %p154_p10 = scmp.eq.s32.totalorder %s1426_s28, 1 }
  0x18   : > { %p1215_p9 = por %p148_p6, %p60_p1  ;;  %p738_p12 = scmp.ge.s32.totalorder %s1123_s26, 2 }
  0x19   : > { %s1222_s11 = scalar_select %p51_p7, %s1111_s23, %s53_s30  }
  0x1a   : > { %p1224_p11 = por %p154_p10, %p66_p3  ;;  %p800_p13 = scmp.lt.s32.totalorder %s1123_s26, 2 }
  0x1b   : > { %1441 = sst [smem:[#allocation23_spill]] %s1222_s11  ;;  %s252_s13 = sand.u32 1, %s1111_s23  }
  0x1c   : > { %s1442_s12 = scalar_select %p1224_p11, 1, 0 }
  0x1d   : > { %s739_s14 = sshll.u32 %s252_s13, 3  ;;  %s740_s15 = sshll.u32 %s1119_s25, 3 }
  0x1e   : > { %1443 = sst [smem:[#allocation24_spill]] %s1442_s12  ;;  %p1234_p0 = pnand %p800_p13, %p1203_p4 }
  0x1f   : > { %s272_s17 = sand.u32 1, %s1123_s26   ;;  %s1445_s1 = sld [smem:[#allocation25_spill]] }
  0x20   : > { %s276_s8 = scalar_lea.vmem [#allocation5], %s739_s14  ;;  %s273_s29 = scalar_lea.sflag [#allocation6], %s272_s17 }
  0x21   : > { %s285_s28 = sshll.u32 %s276_s8, 4  ;;  %p745_p1 = scmp.ge.s32.totalorder %s1123_s26, 1  ;;  %s286_s28 = int_to_ptr.vmem [resolvable:$true] %s285_s28 }
  0x22   : > { %p310_p2 = scmp.lt.s32.totalorder %s1123_s26, 3  ;;  %s261_s18 = scalar_lea.hbm %s1419_s0, %s740_s15 }
  0x23   : > { %s263_s19 = sshll.u32 %s261_s18, 4  ;;  %s253_s8 = scalar_lea.sflag [#allocation3], %s252_s13  ;;  %s264_s19 = int_to_ptr.hbm [resolvable:$true] %s263_s19 }
  0x24   : > { %p1246_p3 = pnand %p745_p1, %p310_p2  ;;  %s296_s26 = scalar_lea.vmem [#allocation7], %s739_s14 }
  0x25   : > { %s281_s20 = scalar_lea.hbm %s1445_s1, %s740_s15  ;;  %s305_s12 = sshll.u32 %s296_s26, 4  ;;  %s306_s12 = int_to_ptr.vmem [resolvable:$true] %s305_s12 }
  0x26   : > { %s283_s30 = sshll.u32 %s281_s20, 4  ;;  %s256_s20 = scalar_lea.vmem [#allocation2], %s739_s14  ;;  %s284_s30 = int_to_ptr.hbm [resolvable:$true] %s283_s30 }
  0x27   : > { %783 = dma.hbm_to_vmem [thread:$0]  (!%p1234_p0), %s284_s30, 128, %s286_s28, %s273_s29  }
  0x28   : > { %s265_s1 = sshll.u32 %s256_s20, 4  ;;  %s301_s30 = scalar_lea.hbm %s1421_s2, %s740_s15  ;;  %s266_s1 = int_to_ptr.vmem [resolvable:$true] %s265_s1 }
  0x29   : > { %780 = dma.hbm_to_vmem [thread:$0]  (!%p1234_p0), %s264_s19, 128, %s266_s1, %s253_s8  }
  0x2a   : > { %s303_s23 = sshll.u32 %s301_s30, 4  ;;  %314 = sbr.rel (%p1246_p3) target bundleno = 108 (0x6c), region = 32  ;;  %s304_s23 = int_to_ptr.hbm [resolvable:$true] %s303_s23 }
  0x2b   : > { %786 = dma.hbm_to_vmem [thread:$0]  (!%p1234_p0), %s304_s23, 128, %s306_s12, %s273_s29  }
  0x2c   : > { %s1263_s25 = sand.u32 (!%p1246_p3), 1, %s1107_s22  }
  0x2d   : > { %s1266_s1 = sshll.u32 (!%p1246_p3), %s1263_s25, 3  ;;  %s317_s11 = scalar_lea.sflag (!%p1246_p3), [#allocation3], %s1263_s25 }
  0x2e   : > { %s320_s13 = scalar_lea.vmem (!%p1246_p3), [#allocation2], %s1266_s1 }
  0x2f   : > { %1082 = dma.done.wait (%p1211_p8), %s317_s11, 128  }
  0x30   : > { %1084 = vsyncadd (%p1211_p8), %s317_s11, 4294967168  ;;  %s326_s23 = sand.u32 1, %s1191_s27   ;;  %s330_s29 = scalar_lea.vmem [#allocation5], %s1266_s1 }
  0x31   : > { %s327_s26 = scalar_lea.sflag [#allocation6], %s326_s23 }
  0x32   : > { %1086 = dma.done.wait (%p1211_p8), %s327_s26, 256  }
  0x33   : > { %1088 = vsyncadd (%p1211_p8), %s327_s26, 4294967040  ;;  %s1283_s12 = sshll.u32 %s1115_s24, 3  ;;  %v407_v0 = vld [vmem:[%s330_s29] sm:$0xff]  ;;  %s340_s7 = scalar_lea.vmem [#allocation7], %s1266_s1  ;;  %v406_v2 = vld [vmem:[%s320_s13] sm:$0xff] }
  0x34   : > { %s481_s16 = scalar_lea.hbm %s1423_s4, %s1283_s12  ;;  %v408_v1 = vld [vmem:[%s340_s7] sm:$0xff]  ;;  %v411_v4 = vsub.f32 1.0, %v407_v0  ;;  %851 = vlog2.f32 %v406_v2  ;;  %v417_v5 = vsub.f32 1.0, %v406_v2  ;;  %s380_s9 = scalar_lea.vmem [#allocation9], %s1266_s1 }
  0x35   : > { %v1290_v3 = vmul.f32 %v408_v1, %v407_v0  ;;  %s1293_s18 = sshll.u32 %s380_s9, 4  ;;  %s1295_s24 = sshll.u32 %s481_s16, 4  ;;  %s484_s18 = int_to_ptr.vmem [resolvable:$true] %s1293_s18  ;;  %s486_s24 = int_to_ptr.hbm [resolvable:$true] %s1295_s24 }
  0x36   : > { %s495_s8 = scalar_lea.hbm %s1424_s5, %s1283_s12  ;;  %s387_s28 = scalar_lea.vmem [#allocation11], %s1266_s1  ;;  %v412_v7 = vmul.f32 %v411_v4, %v408_v1  ;;  %853 = vlog2.f32 %v417_v5 }
  0x37   : > { %s1304_s17 = sshll.u32 %s387_s28, 4  ;;  %v410_v6 = vfloor.f32 %v1290_v3  ;;  %s1307_s30 = sshll.u32 %s495_s8, 4  ;;  %s498_s17 = int_to_ptr.vmem [resolvable:$true] %s1304_s17  ;;  %s500_s30 = int_to_ptr.hbm [resolvable:$true] %s1307_s30 }
  0x38   : > { %v413_v8 = vfloor.f32 %v412_v7  ;;  %s1315_s11 = scalar_lea.sflag [#allocation10], %s326_s23  ;;  %s959_s13 = sshra.s32 %s486_s24, 4  ;;  %s960_s13 = int_to_ptr.hbm [resolvable:$true] %s959_s13 }
  0x39   : > { %430 = vst [vmem:[%s380_s9] sm:$0xff] %v410_v6  ;;  %s961_s26 = scalar_lea.hbm %s960_s13, 8  ;;  %s965_s15 = scalar_lea.hbm %s1423_s4, 16 }
  0x3a   : > { %v852_v9 = vpop.eup %851  ;;  %p962_p4 = scmp.ne.s32.totalorder %s960_s13, %s961_s26  ;;  %p966_p7 = scmp.lt.s32.totalorder %s960_s13, %s1423_s4 }
  0x3b   : > { %v415_v10 = vmul.f32 0.6931472, %v852_v9  ;;  %p967_p8 = scmp.lt.s32.totalorder %s965_s15, %s961_s26 }
  0x3c   : > { %p963_p5 = pnand %p962_p4, %p1215_p9 }
  0x3d   : > { %p968_p10 = por %p967_p8, %p966_p7 }
  0x3e   : > { %p964_p6 = pneg %p963_p5 }
  0x40   : > { %p969_p13 = pnand %p968_p10, %p964_p6 }
  0x42   : > { %972 = shalt.err (!%p969_p13)
}
  0x43   : > { %770 = dma.vmem_to_hbm [thread:$0]  (%p1215_p9), %s484_s18, 128, %s486_s24, %s1315_s11   ;;  %v854_v11 = vpop.eup %853  ;;  %434 = vst [vmem:[%s387_s28] sm:$0xff] %v413_v8  ;;  %v416_v12 = vmax.f32 %v415_v10, -100.0 }
  0x44   : > { %v419_v13 = vmul.f32 0.6931472, %v854_v11  ;;  %s987_s27 = sshra.s32 %s500_s30, 4  ;;  %s993_s20 = scalar_lea.hbm %s1424_s5, 16  ;;  %s988_s27 = int_to_ptr.hbm [resolvable:$true] %s987_s27 }
  0x45   : > { %s989_s23 = scalar_lea.hbm %s988_s27, 8  ;;  %p994_p3 = scmp.lt.s32.totalorder %s988_s27, %s1424_s5 }
  0x46   : > { %p990_p0 = scmp.ne.s32.totalorder %s988_s27, %s989_s23  ;;  %p995_p4 = scmp.lt.s32.totalorder %s993_s20, %s989_s23 }
  0x48   : > { %p991_p1 = pnand %p990_p0, %p1215_p9  ;;  %p996_p5 = por %p995_p4, %p994_p3 }
  0x4a   : > { %p992_p2 = pneg %p991_p1 }
  0x4c   : > { %p997_p6 = pnand %p996_p5, %p992_p2 }
  0x4e   : > { %1000 = shalt.err (!%p997_p6)
}
  0x4f   : > { %771 = dma.vmem_to_hbm [thread:$0]  (%p1215_p9), %s498_s17, 128, %s500_s30, %s1315_s11   ;;  %v420_v14 = vmax.f32 %v419_v13, -100.0  ;;  %v421_v15 = vmul.f32 %v416_v12, %v407_v0 }
  0x50   : > { %s467_s28 = scalar_lea.hbm %s1422_s3, %s1283_s12  ;;  %s373_s26 = scalar_lea.vmem [#allocation8], %s1266_s1 }
  0x51   : > { %v422_v16 = vmul.f32 %v420_v14, %v411_v4  ;;  %s1352_s29 = sshll.u32 %s373_s26, 4  ;;  %s509_s16 = scalar_lea.hbm %s1425_s6, %s1283_s12  ;;  %s470_s29 = int_to_ptr.vmem [resolvable:$true] %s1352_s29 }
  0x52   : > { %s471_s7 = sshll.u32 %s467_s28, 4  ;;  %s394_s17 = scalar_lea.vmem [#allocation12], %s1266_s1  ;;  %s472_s7 = int_to_ptr.hbm [resolvable:$true] %s471_s7 }
  0x53   : > { %v423_v17 = vadd.f32 %v422_v16, %v421_v15  ;;  %s1360_s30 = sshll.u32 %s394_s17, 4  ;;  %s1362_s11 = sshll.u32 %s509_s16, 4  ;;  %s512_s30 = int_to_ptr.vmem [resolvable:$true] %s1360_s30  ;;  %s514_s11 = int_to_ptr.hbm [resolvable:$true] %s1362_s11 }
  0x54   : > { %s441_s27 = scalar_lea.sflag [#allocation4], %s1263_s25  ;;  %s1015_s23 = sshra.s32 %s472_s7, 4  ;;  %s1016_s23 = int_to_ptr.hbm [resolvable:$true] %s1015_s23 }
  0x55   : > { %v424_v18 = vsub.f32 0.0, %v423_v17  ;;  %s1017_s12 = scalar_lea.hbm %s1016_s23, 8  ;;  %s1021_s19 = scalar_lea.hbm %s1422_s3, 16 }
  0x56   : > { %p1018_p7 = scmp.ne.s32.totalorder %s1016_s23, %s1017_s12  ;;  %p1022_p13 = scmp.lt.s32.totalorder %s1016_s23, %s1422_s3 }
  0x57   : > { %v425_v19 = vmul.f32 %v424_v18, %v413_v8  ;;  %v436_v20 = vmul.f32 %v424_v18, %v410_v6  ;;  %p1023_p0 = scmp.lt.s32.totalorder %s1021_s19, %s1017_s12 }
  0x58   : > { %p1019_p8 = pnand %p1018_p7, %p1215_p9 }
  0x59   : > { %426 = vst [vmem:[%s373_s26] sm:$0xff] %v425_v19  ;;  %p1024_p1 = por %p1023_p0, %p1022_p13 }
  0x5a   : > { %p1020_p10 = pneg %p1019_p8 }
  0x5c   : > { %p1025_p2 = pnand %p1024_p1, %p1020_p10 }
  0x5e   : > { %1028 = shalt.err (!%p1025_p2)
}
  0x5f   : > { %769 = dma.vmem_to_hbm [thread:$0]  (%p1215_p9), %s470_s29, 128, %s472_s7, %s441_s27   ;;  %439 = vst [vmem:[%s394_s17] sm:$0xff] %v436_v20 }
  0x60   : > { %s456_s13 = scalar_lea.sflag [#allocation13], %s1263_s25  ;;  %s1043_s18 = sshra.s32 %s514_s11, 4  ;;  %s1044_s18 = int_to_ptr.hbm [resolvable:$true] %s1043_s18 }
  0x61   : > { %s1045_s24 = scalar_lea.hbm %s1044_s18, 8  ;;  %s1049_s14 = scalar_lea.hbm %s1425_s6, 16 }
  0x62   : > { %p1046_p3 = scmp.ne.s32.totalorder %s1044_s18, %s1045_s24  ;;  %p1050_p6 = scmp.lt.s32.totalorder %s1044_s18, %s1425_s6 }
  0x63   : > { %p1051_p7 = scmp.lt.s32.totalorder %s1049_s14, %s1045_s24 }
  0x64   : > { %p1047_p4 = pnand %p1046_p3, %p1215_p9 }
  0x65   : > { %p1052_p8 = por %p1051_p7, %p1050_p6 }
  0x66   : > { %p1048_p5 = pneg %p1047_p4 }
  0x68   : > { %p1053_p10 = pnand %p1052_p8, %p1048_p5 }
  0x6a   : > { %1056 = shalt.err (!%p1053_p10)
}
  0x6b   : > { %772 = dma.vmem_to_hbm [thread:$0]  (%p1215_p9), %s512_s30, 128, %s514_s11, %s456_s13  }
  0x6c PF: > { %s1448_s29 = sld [smem:[#allocation21_spill]]  ;;  %s525_s7 = sand.u32 1, %s1103_s21  }
  0x6d   : > { %p788_p13 = pnand %p738_p12, %p1224_p11  ;;  %s526_s17 = scalar_lea.sflag [#allocation4], %s525_s7 }
  0x6f   : > { %p789_p0 = pneg %p788_p13 }
  0x71   : > { %1090 = dma.done.wait (%p789_p0), %s526_s17, 128  }
  0x72   : > { %1092 = vsyncadd (%p789_p0), %s526_s17, 4294967168  ;;  %s1449_s27 = sadd.s32 4294967294, %s1448_s29  }
  0x73   : > { %s535_s10 = sand.u32 1, %s1449_s27  }
  0x74   : > { %s536_s23 = scalar_lea.sflag [#allocation10], %s535_s10 }
  0x75   : > { %1094 = dma.done.wait (%p789_p0), %s536_s23, 256  }
  0x76   : > { %1096 = vsyncadd (%p789_p0), %s536_s23, 4294967040  ;;  %s556_s12 = scalar_lea.sflag [#allocation13], %s525_s7 }
  0x77   : > { %1098 = dma.done.wait (%p789_p0), %s556_s12, 128  }
  0x78   : > { %1100 = vsyncadd (%p789_p0), %s556_s12, 4294967168  ;;  %s32_s26 = sadd.s32 1, %s1448_s29   ;;  %s1450_s30 = sld [smem:[#allocation19_spill]] }
  0x79   : > { %p29_p9 = scmp.ge.s32.totalorder %s32_s26, 4   ;;  %s1451_s23 = sld [smem:[#allocation23_spill]] }
  0x7a   : > { %s1452_s24 = sld [smem:[#allocation20_spill]]  ;;  %s1454_s21 = smov %s1107_s22 }
  0x7b   : > { %s1453_s25 = sld [smem:[#allocation22_spill]]  ;;  %31 = sbr.rel (!%p29_p9) target bundleno = 14 (0xe), region = 154 }
  0x7e   : > { %s1455_s22 = smov %s1450_s30 }
  0x80   :  { %562 = vsyncpa [#allocation3], 1 }
  0x81   :  { %564 = vsyncpa [#allocation3 + $0x1], 1 }
  0x82   :  { %565 = vsyncpa [#allocation6], 1 }
  0x83   :  { %567 = vsyncpa [#allocation6 + $0x1], 1 }
  0x84   :  { %568 = vsyncpa [#allocation4], 1 }
  0x85   :  { %570 = vsyncpa [#allocation4 + $0x1], 1 }
  0x86   :  { %571 = vsyncpa [#allocation10], 1 }
  0x87   :  { %573 = vsyncpa [#allocation10 + $0x1], 1 }
  0x88   :  { %574 = vsyncpa [#allocation13], 1 }
  0x89   :  { %576 = vsyncpa [#allocation13 + $0x1], 1 }

</bundles_post_ra>
